<compile_context>
chip_gen: v7x
topology: tpu7x:2x2x1
jax: 0.10.0
libtpu: 0.0.40
codegen_flags: <defaults>
</compile_context>

<pallas_src>
import math
import functools
import numpy as np
import jax
import jax.numpy as jnp
from jax.experimental import pallas as pl
from jax.experimental.pallas import tpu as pltpu


def _leaky_relu(x):
    return jnp.where(x > 0, x, 0.2 * x)


def _group_gat_kernel(h_ref, wv_ref, w_ref, bias_ref, out_ref, *, num_ally, num_opp):
    # h_ref:    (Bt, N_tot, Din)  full node axis; node 0 == self
    # wv_ref:   (4, Din)          rows: [ally_self, ally_other, opp_self, opp_other] = W_g @ a_g halves
    # w_ref:    (2*Din, C)        stacked [W_ally; W_opp]
    # bias_ref: (Bt, N_tot)       additive mask bias: 0 keep / -1e30 masked (col 0 unused)
    # out_ref:  (Bt, C)
    h = h_ref[...]                                   # (Bt, N, Din)
    wv = wv_ref[...]                                 # (4, Din)
    bias = bias_ref[...]                             # (Bt, N)
    h_self = h[:, 0, :]                              # (Bt, Din)

    def attend(h_tail, bias_tail, wv_self, wv_other):
        # Group = {self} + tail.  h_tail: (Bt, Nt, Din); bias_tail: (Bt, Nt); wv_*: (1, Din)
        # Logits on VPU/XLU (attention vectors already folded through W):
        #   e[b, j] = LeakyReLU( h_self[b]·wv_self + h_j[b]·wv_other ) (+ bias for tail)
        e_s = jnp.sum(h_self * wv_self, axis=-1, keepdims=True)                     # (Bt, 1)
        e0 = _leaky_relu(e_s + jnp.sum(h_self * wv_other, axis=-1, keepdims=True))  # self as member
        if h_tail.shape[1] == 0:
            return h_self                                                           # softmax over {self}

        e_t = _leaky_relu(
            e_s + jnp.sum(h_tail * wv_other[None, :, :], axis=-1)) + bias_tail      # (Bt, Nt)

        # Stable softmax; masked lanes (-1e30 bias) underflow to exactly 0, so no
        # post-softmax zeroing is needed (self entry is never masked).
        m = jnp.maximum(e0, jnp.max(e_t, axis=-1, keepdims=True))                   # (Bt, 1)
        p0 = jnp.exp(e0 - m)                                                        # (Bt, 1)
        p = jnp.exp(e_t - m)                                                        # (Bt, Nt)
        denom = p0 + jnp.sum(p, axis=-1, keepdims=True)
        r = pl.reciprocal(denom, approx=True)                                       # EUP
        r = r * (2.0 - denom * r)                                                   # 1 Newton step -> ~f32 exact
        att = p * r                                                                 # (Bt, Nt)

        # Aggregate RAW features (projection through W happens afterwards, by
        # linearity).  Unrolled VPU broadcast-FMA over the tiny node axis.
        agg = (p0 * r) * h_self                                                     # (Bt, Din)
        for n in range(h_tail.shape[1]):
            agg = agg + att[:, n:n + 1] * h_tail[:, n, :]
        return agg                                                                  # (Bt, Din)

    na = 1 + num_ally
    agg_a = attend(h[:, 1:na, :], bias[:, 1:na], wv[0:1, :], wv[1:2, :])
    agg_o = attend(h[:, na:, :], bias[:, na:], wv[2:3, :], wv[3:4, :])

    # (h_self + agg_ally) @ W_ally + agg_opp @ W_opp, fused into one MXU matmul.
    x = jnp.concatenate([h_self + agg_a, agg_o], axis=-1)                           # (Bt, 2*Din)
    s = jnp.dot(x, w_ref[...], preferred_element_type=jnp.float32)                  # (Bt, C)

    # ELU (alpha = 1); clamp exp arg so the untaken branch cannot overflow.
    out = jnp.where(s > 0, s, jnp.exp(jnp.minimum(s, 0.0)) - 1.0)
    out_ref[...] = out.astype(out_ref.dtype)


def group_gat_forward(h, W_ally, W_opp, a_ally, a_opp, mask, num_ally, num_opp,
                      *, block_b=None):
    """h: (B, 1+num_ally+num_opp, Din); W_*: (Din, C); a_*: (2C, 1);
    mask: (B, 1+num_ally+num_opp) with 1 == masked.  Returns (B, C) f32."""
    f32 = jnp.float32
    B, N_tot, Din = h.shape
    assert N_tot == 1 + num_ally + num_opp
    C = W_ally.shape[1]

    h = h.astype(f32)
    mask = mask.astype(f32)
    W_ally = W_ally.astype(f32)
    W_opp = W_opp.astype(f32)
    a_ally = a_ally.astype(f32)
    a_opp = a_opp.astype(f32)

    # Fold attention vectors through W:  e[j] = h[j]·(W @ a_half)  (tiny, one-time XLA work).
    wv = jnp.concatenate([
        (W_ally @ a_ally[:C]).T,      # (1, Din) ally: self half
        (W_ally @ a_ally[C:]).T,      # (1, Din) ally: other half
        (W_opp @ a_opp[:C]).T,        # (1, Din) opp:  self half
        (W_opp @ a_opp[C:]).T,        # (1, Din) opp:  other half
    ], axis=0)                        # (4, Din)

    W_stack = jnp.concatenate([W_ally, W_opp], axis=0)            # (2*Din, C)

    # Additive mask bias over the full node axis (col 0 / self never used in-kernel).
    bias = jnp.where(mask > 0, f32(-1e30), f32(0.0))              # (B, N_tot)

    # ---- batch tiling: one grid step handles block_b graphs ----
    if block_b is None:
        if B <= 16:
            block_b = B                                           # single step, full dim (legal block)
        else:
            # >= 2 grid steps so dimension_semantics=("parallel",) can shard across
            # both v7x TensorCores; multiple of 8 (sublane legality); capped at 512
            # (per-block VMEM at Din=16 is only tens of KiB even at 512).
            half = -(-B // 2)
            block_b = max(8, min(512, (half // 8) * 8))
    grid = (pl.cdiv(B, block_b),)     # ragged last block OK: per-row math, OOB stores dropped

    grid_spec = pltpu.PrefetchScalarGridSpec(
        num_scalar_prefetch=0,
        grid=grid,
        in_specs=[
            pl.BlockSpec((block_b, N_tot, Din), lambda b: (b, 0, 0)),  # h (single copy, sliced in-kernel)
            pl.BlockSpec((4, Din), lambda b: (0, 0)),                  # wv   (grid-invariant, not re-DMA'd)
            pl.BlockSpec((2 * Din, C), lambda b: (0, 0)),              # W_stack (grid-invariant)
            pl.BlockSpec((block_b, N_tot), lambda b: (b, 0)),          # mask bias
        ],
        out_specs=pl.BlockSpec((block_b, C), lambda b: (b, 0)),
    )

    kernel = functools.partial(_group_gat_kernel, num_ally=num_ally, num_opp=num_opp)

    out = pl.pallas_call(
        kernel,
        out_shape=jax.ShapeDtypeStruct((B, C), f32),
        grid_spec=grid_spec,
        compiler_params=pltpu.CompilerParams(dimension_semantics=("parallel",)),
    )(h, wv, W_stack, bias)
    return out


def group_gat_reference(h, W_ally, W_opp, a_ally, a_opp, mask, num_ally, num_opp):
    """Pure-JAX reference mirroring the PyTorch GroupGAT.forward (add_self, add_elu)."""
    h_self = h[:, 0:1, :]
    h_a = jnp.concatenate([h_self, h[:, 1:1 + num_ally, :]], axis=1)
    h_o = jnp.concatenate([h_self, h[:, 1 + num_ally:, :]], axis=1)
    m_self = jnp.zeros_like(mask[:, 0:1])
    m_a = jnp.concatenate([m_self, mask[:, 1:1 + num_ally]], axis=1)
    m_o = jnp.concatenate([m_self, mask[:, 1 + num_ally:]], axis=1)
    H_a = jnp.matmul(h_a, W_ally)                      # (B, Na, C)
    H_o = jnp.matmul(h_o, W_opp)                       # (B, No, C)

    def group(H, a, m):
        N = H.shape[1]
        inp = jnp.concatenate([jnp.repeat(H[:, 0:1, :], N, axis=1), H], axis=2)  # (B,N,2C)
        e = jnp.matmul(inp, a)[..., 0]                                            # (B, N)
        e = jnp.where(e > 0, e, 0.2 * e)                                          # LeakyReLU 0.2
        masked = m > 0
        e = jnp.where(masked, -jnp.inf, e)
        att = jax.nn.softmax(e, axis=-1)
        att = jnp.where(masked, 0.0, att)
        return jnp.matmul(att[:, None, :], H)[:, 0, :]                            # (B, C)

    ws_a = group(H_a, a_ally, m_a)
    ws_o = group(H_o, a_opp, m_o)
    s = H_a[:, 0, :] + ws_a + ws_o
    return jnp.where(s > 0, s, jnp.exp(jnp.minimum(s, 0.0)) - 1.0)                # ELU


if __name__ == "__main__":
    B = 2
    input_dim, hidden_dim = 16, 32
    num_ally, num_opp = 4, 3
    num_node = 1 + num_ally + num_opp            # 8

    key = jax.random.PRNGKey(0)
    k_h, k_wa, k_wo, k_aa, k_ao, k_m = jax.random.split(key, 6)

    # Deterministic xavier_uniform_(gain=1.414)-style init for the parameters.
    gain = 1.414

    def xavier(k, shape):
        bound = gain * math.sqrt(6.0 / (shape[0] + shape[1]))
        return jax.random.uniform(k, shape, jnp.float32, -bound, bound)

    W_ally = xavier(k_wa, (input_dim, hidden_dim))
    W_opp = xavier(k_wo, (input_dim, hidden_dim))
    a_ally = xavier(k_aa, (2 * hidden_dim, 1))
    a_opp = xavier(k_ao, (2 * hidden_dim, 1))

    h = jax.random.normal(k_h, (B, num_node, input_dim), jnp.float32)
    # mask: (B, num_node), 1.0 == masked.  The module forces the self entry unmasked,
    # so no row can be fully masked.
    mask = jax.random.bernoulli(k_m, 0.3, (B, num_node)).astype(jnp.float32)

    fwd = jax.jit(group_gat_forward, static_argnums=(6, 7))
    out = jax.block_until_ready(fwd(h, W_ally, W_opp, a_ally, a_opp, mask,
                                    num_ally, num_opp))
    ref = jax.block_until_ready(group_gat_reference(h, W_ally, W_opp, a_ally, a_opp,
                                                    mask, num_ally, num_opp))

    assert out.shape == (B, hidden_dim)
    assert not np.isnan(np.asarray(out)).any()
    np.testing.assert_allclose(np.asarray(out), np.asarray(ref), rtol=1e-4, atol=1e-4)
    print("KERNEL_OK")
</pallas_src>

<mosaic_0001>
module attributes {stable_mosaic.version = 11 : i64} {
  func.func @_group_gat_kernel(%arg0: i32, %arg1: memref<2x8x16xf32, #tpu.memory_space<vmem>>, %arg2: memref<4x16xf32, #tpu.memory_space<vmem>>, %arg3: memref<32x32xf32, #tpu.memory_space<vmem>>, %arg4: memref<2x8xf32, #tpu.memory_space<vmem>>, %arg5: memref<2x32xf32, #tpu.memory_space<vmem>>) attributes {dimension_semantics = [#tpu.dimension_semantics<parallel>], iteration_bounds = array<i64: 1>, scalar_prefetch = 0 : i64, scratch_operands = 0 : i64, tpu.core_type = #tpu.core_type<tc>, window_params = [{transform_indices = @transform_0, window_bounds = array<i64: 2, 8, 16>}, {pipeline_mode = #tpu.pipeline_mode<synchronous>, transform_indices = @transform_1, window_bounds = array<i64: 4, 16>}, {pipeline_mode = #tpu.pipeline_mode<synchronous>, transform_indices = @transform_2, window_bounds = array<i64: 32, 32>}, {transform_indices = @transform_3, window_bounds = array<i64: 2, 8>}, {transform_indices = @transform_4, window_bounds = array<i64: 2, 32>}]} {
    %c0 = arith.constant 0 : index
    %c0_0 = arith.constant 0 : index
    %c0_1 = arith.constant 0 : index
    %0 = vector.load %arg1[%c0, %c0_0, %c0_1] : memref<2x8x16xf32, #tpu.memory_space<vmem>>, vector<2x8x16xf32>
    %c0_2 = arith.constant 0 : index
    %c0_3 = arith.constant 0 : index
    %1 = vector.load %arg2[%c0_2, %c0_3] : memref<4x16xf32, #tpu.memory_space<vmem>>, vector<4x16xf32>
    %c0_4 = arith.constant 0 : index
    %c0_5 = arith.constant 0 : index
    %2 = vector.load %arg4[%c0_4, %c0_5] : memref<2x8xf32, #tpu.memory_space<vmem>>, vector<2x8xf32>
    %3 = vector.extract_strided_slice %0 {offsets = [0, 0, 0], sizes = [2, 1, 16], strides = [1, 1, 1]} : vector<2x8x16xf32> to vector<2x1x16xf32>
    %4 = vector.shape_cast %3 : vector<2x1x16xf32> to vector<2x16xf32>
    %5 = vector.extract_strided_slice %0 {offsets = [0, 1, 0], sizes = [2, 4, 16], strides = [1, 1, 1]} : vector<2x8x16xf32> to vector<2x4x16xf32>
    %6 = vector.extract_strided_slice %2 {offsets = [0, 1], sizes = [2, 4], strides = [1, 1]} : vector<2x8xf32> to vector<2x4xf32>
    %7 = vector.extract_strided_slice %1 {offsets = [0, 0], sizes = [1, 16], strides = [1, 1]} : vector<4x16xf32> to vector<1x16xf32>
    %8 = vector.extract_strided_slice %1 {offsets = [1, 0], sizes = [1, 16], strides = [1, 1]} : vector<4x16xf32> to vector<1x16xf32>
    %9 = vector.broadcast %7 : vector<1x16xf32> to vector<2x16xf32>
    %10 = arith.mulf %4, %9 : vector<2x16xf32>
    %cst = arith.constant dense<0.000000e+00> : vector<2xf32>
    %11 = vector.multi_reduction <add>, %10, %cst [1] : vector<2x16xf32> to vector<2xf32>
    %12 = vector.shape_cast %11 : vector<2xf32> to vector<2x1xf32>
    %13 = vector.broadcast %8 : vector<1x16xf32> to vector<2x16xf32>
    %14 = arith.mulf %4, %13 : vector<2x16xf32>
    %cst_6 = arith.constant dense<0.000000e+00> : vector<2xf32>
    %15 = vector.multi_reduction <add>, %14, %cst_6 [1] : vector<2x16xf32> to vector<2xf32>
    %16 = vector.shape_cast %15 : vector<2xf32> to vector<2x1xf32>
    %17 = arith.addf %12, %16 : vector<2x1xf32>
    %cst_7 = arith.constant 0.000000e+00 : f32
    %18 = vector.broadcast %cst_7 : f32 to vector<2x1xf32>
    %19 = arith.cmpf ogt, %17, %18 : vector<2x1xf32>
    %cst_8 = arith.constant 2.000000e-01 : f32
    %20 = vector.broadcast %cst_8 : f32 to vector<2x1xf32>
    %21 = arith.mulf %20, %17 : vector<2x1xf32>
    %22 = arith.select %19, %17, %21 : vector<2x1xi1>, vector<2x1xf32>
    %23 = vector.shape_cast %8 : vector<1x16xf32> to vector<1x1x16xf32>
    %24 = vector.broadcast %23 : vector<1x1x16xf32> to vector<2x4x16xf32>
    %25 = arith.mulf %5, %24 : vector<2x4x16xf32>
    %cst_9 = arith.constant dense<0.000000e+00> : vector<2x4xf32>
    %26 = vector.multi_reduction <add>, %25, %cst_9 [2] : vector<2x4x16xf32> to vector<2x4xf32>
    %27 = vector.broadcast %12 : vector<2x1xf32> to vector<2x4xf32>
    %28 = arith.addf %27, %26 : vector<2x4xf32>
    %cst_10 = arith.constant 0.000000e+00 : f32
    %29 = vector.broadcast %cst_10 : f32 to vector<2x4xf32>
    %30 = arith.cmpf ogt, %28, %29 : vector<2x4xf32>
    %cst_11 = arith.constant 2.000000e-01 : f32
    %31 = vector.broadcast %cst_11 : f32 to vector<2x4xf32>
    %32 = arith.mulf %31, %28 : vector<2x4xf32>
    %33 = arith.select %30, %28, %32 : vector<2x4xi1>, vector<2x4xf32>
    %34 = arith.addf %33, %6 : vector<2x4xf32>
    %cst_12 = arith.constant dense<0xFF800000> : vector<2xf32>
    %35 = vector.multi_reduction <maximumf>, %34, %cst_12 [1] : vector<2x4xf32> to vector<2xf32>
    %36 = vector.shape_cast %35 : vector<2xf32> to vector<2x1xf32>
    %37 = arith.maximumf %22, %36 : vector<2x1xf32>
    %38 = arith.subf %22, %37 : vector<2x1xf32>
    %39 = math.exp %38 : vector<2x1xf32>
    %40 = vector.broadcast %37 : vector<2x1xf32> to vector<2x4xf32>
    %41 = arith.subf %34, %40 : vector<2x4xf32>
    %42 = math.exp %41 : vector<2x4xf32>
    %cst_13 = arith.constant dense<0.000000e+00> : vector<2xf32>
    %43 = vector.multi_reduction <add>, %42, %cst_13 [1] : vector<2x4xf32> to vector<2xf32>
    %44 = vector.shape_cast %43 : vector<2xf32> to vector<2x1xf32>
    %45 = arith.addf %39, %44 : vector<2x1xf32>
    %46 = tpu.reciprocal %45 {approx = true} : vector<2x1xf32> -> vector<2x1xf32>
    %47 = arith.mulf %45, %46 : vector<2x1xf32>
    %cst_14 = arith.constant 2.000000e+00 : f32
    %48 = vector.broadcast %cst_14 : f32 to vector<2x1xf32>
    %49 = arith.subf %48, %47 : vector<2x1xf32>
    %50 = arith.mulf %46, %49 : vector<2x1xf32>
    %51 = vector.broadcast %50 : vector<2x1xf32> to vector<2x4xf32>
    %52 = arith.mulf %42, %51 : vector<2x4xf32>
    %53 = arith.mulf %39, %50 : vector<2x1xf32>
    %54 = vector.broadcast %53 : vector<2x1xf32> to vector<2x16xf32>
    %55 = arith.mulf %54, %4 : vector<2x16xf32>
    %56 = vector.extract_strided_slice %52 {offsets = [0, 0], sizes = [2, 1], strides = [1, 1]} : vector<2x4xf32> to vector<2x1xf32>
    %57 = vector.extract_strided_slice %5 {offsets = [0, 0, 0], sizes = [2, 1, 16], strides = [1, 1, 1]} : vector<2x4x16xf32> to vector<2x1x16xf32>
    %58 = vector.shape_cast %57 : vector<2x1x16xf32> to vector<2x16xf32>
    %59 = vector.broadcast %56 : vector<2x1xf32> to vector<2x16xf32>
    %60 = arith.mulf %59, %58 : vector<2x16xf32>
    %61 = arith.addf %55, %60 : vector<2x16xf32>
    %62 = vector.extract_strided_slice %52 {offsets = [0, 1], sizes = [2, 1], strides = [1, 1]} : vector<2x4xf32> to vector<2x1xf32>
    %63 = vector.extract_strided_slice %5 {offsets = [0, 1, 0], sizes = [2, 1, 16], strides = [1, 1, 1]} : vector<2x4x16xf32> to vector<2x1x16xf32>
    %64 = vector.shape_cast %63 : vector<2x1x16xf32> to vector<2x16xf32>
    %65 = vector.broadcast %62 : vector<2x1xf32> to vector<2x16xf32>
    %66 = arith.mulf %65, %64 : vector<2x16xf32>
    %67 = arith.addf %61, %66 : vector<2x16xf32>
    %68 = vector.extract_strided_slice %52 {offsets = [0, 2], sizes = [2, 1], strides = [1, 1]} : vector<2x4xf32> to vector<2x1xf32>
    %69 = vector.extract_strided_slice %5 {offsets = [0, 2, 0], sizes = [2, 1, 16], strides = [1, 1, 1]} : vector<2x4x16xf32> to vector<2x1x16xf32>
    %70 = vector.shape_cast %69 : vector<2x1x16xf32> to vector<2x16xf32>
    %71 = vector.broadcast %68 : vector<2x1xf32> to vector<2x16xf32>
    %72 = arith.mulf %71, %70 : vector<2x16xf32>
    %73 = arith.addf %67, %72 : vector<2x16xf32>
    %74 = vector.extract_strided_slice %52 {offsets = [0, 3], sizes = [2, 1], strides = [1, 1]} : vector<2x4xf32> to vector<2x1xf32>
    %75 = vector.extract_strided_slice %5 {offsets = [0, 3, 0], sizes = [2, 1, 16], strides = [1, 1, 1]} : vector<2x4x16xf32> to vector<2x1x16xf32>
    %76 = vector.shape_cast %75 : vector<2x1x16xf32> to vector<2x16xf32>
    %77 = vector.broadcast %74 : vector<2x1xf32> to vector<2x16xf32>
    %78 = arith.mulf %77, %76 : vector<2x16xf32>
    %79 = arith.addf %73, %78 : vector<2x16xf32>
    %80 = vector.extract_strided_slice %0 {offsets = [0, 5, 0], sizes = [2, 3, 16], strides = [1, 1, 1]} : vector<2x8x16xf32> to vector<2x3x16xf32>
    %81 = vector.extract_strided_slice %2 {offsets = [0, 5], sizes = [2, 3], strides = [1, 1]} : vector<2x8xf32> to vector<2x3xf32>
    %82 = vector.extract_strided_slice %1 {offsets = [2, 0], sizes = [1, 16], strides = [1, 1]} : vector<4x16xf32> to vector<1x16xf32>
    %83 = vector.extract_strided_slice %1 {offsets = [3, 0], sizes = [1, 16], strides = [1, 1]} : vector<4x16xf32> to vector<1x16xf32>
    %84 = vector.broadcast %82 : vector<1x16xf32> to vector<2x16xf32>
    %85 = arith.mulf %4, %84 : vector<2x16xf32>
    %cst_15 = arith.constant dense<0.000000e+00> : vector<2xf32>
    %86 = vector.multi_reduction <add>, %85, %cst_15 [1] : vector<2x16xf32> to vector<2xf32>
    %87 = vector.shape_cast %86 : vector<2xf32> to vector<2x1xf32>
    %88 = vector.broadcast %83 : vector<1x16xf32> to vector<2x16xf32>
    %89 = arith.mulf %4, %88 : vector<2x16xf32>
    %cst_16 = arith.constant dense<0.000000e+00> : vector<2xf32>
    %90 = vector.multi_reduction <add>, %89, %cst_16 [1] : vector<2x16xf32> to vector<2xf32>
    %91 = vector.shape_cast %90 : vector<2xf32> to vector<2x1xf32>
    %92 = arith.addf %87, %91 : vector<2x1xf32>
    %cst_17 = arith.constant 0.000000e+00 : f32
    %93 = vector.broadcast %cst_17 : f32 to vector<2x1xf32>
    %94 = arith.cmpf ogt, %92, %93 : vector<2x1xf32>
    %cst_18 = arith.constant 2.000000e-01 : f32
    %95 = vector.broadcast %cst_18 : f32 to vector<2x1xf32>
    %96 = arith.mulf %95, %92 : vector<2x1xf32>
    %97 = arith.select %94, %92, %96 : vector<2x1xi1>, vector<2x1xf32>
    %98 = vector.shape_cast %83 : vector<1x16xf32> to vector<1x1x16xf32>
    %99 = vector.broadcast %98 : vector<1x1x16xf32> to vector<2x3x16xf32>
    %100 = arith.mulf %80, %99 : vector<2x3x16xf32>
    %cst_19 = arith.constant dense<0.000000e+00> : vector<2x3xf32>
    %101 = vector.multi_reduction <add>, %100, %cst_19 [2] : vector<2x3x16xf32> to vector<2x3xf32>
    %102 = vector.broadcast %87 : vector<2x1xf32> to vector<2x3xf32>
    %103 = arith.addf %102, %101 : vector<2x3xf32>
    %cst_20 = arith.constant 0.000000e+00 : f32
    %104 = vector.broadcast %cst_20 : f32 to vector<2x3xf32>
    %105 = arith.cmpf ogt, %103, %104 : vector<2x3xf32>
    %cst_21 = arith.constant 2.000000e-01 : f32
    %106 = vector.broadcast %cst_21 : f32 to vector<2x3xf32>
    %107 = arith.mulf %106, %103 : vector<2x3xf32>
    %108 = arith.select %105, %103, %107 : vector<2x3xi1>, vector<2x3xf32>
    %109 = arith.addf %108, %81 : vector<2x3xf32>
    %cst_22 = arith.constant dense<0xFF800000> : vector<2xf32>
    %110 = vector.multi_reduction <maximumf>, %109, %cst_22 [1] : vector<2x3xf32> to vector<2xf32>
    %111 = vector.shape_cast %110 : vector<2xf32> to vector<2x1xf32>
    %112 = arith.maximumf %97, %111 : vector<2x1xf32>
    %113 = arith.subf %97, %112 : vector<2x1xf32>
    %114 = math.exp %113 : vector<2x1xf32>
    %115 = vector.broadcast %112 : vector<2x1xf32> to vector<2x3xf32>
    %116 = arith.subf %109, %115 : vector<2x3xf32>
    %117 = math.exp %116 : vector<2x3xf32>
    %cst_23 = arith.constant dense<0.000000e+00> : vector<2xf32>
    %118 = vector.multi_reduction <add>, %117, %cst_23 [1] : vector<2x3xf32> to vector<2xf32>
    %119 = vector.shape_cast %118 : vector<2xf32> to vector<2x1xf32>
    %120 = arith.addf %114, %119 : vector<2x1xf32>
    %121 = tpu.reciprocal %120 {approx = true} : vector<2x1xf32> -> vector<2x1xf32>
    %122 = arith.mulf %120, %121 : vector<2x1xf32>
    %cst_24 = arith.constant 2.000000e+00 : f32
    %123 = vector.broadcast %cst_24 : f32 to vector<2x1xf32>
    %124 = arith.subf %123, %122 : vector<2x1xf32>
    %125 = arith.mulf %121, %124 : vector<2x1xf32>
    %126 = vector.broadcast %125 : vector<2x1xf32> to vector<2x3xf32>
    %127 = arith.mulf %117, %126 : vector<2x3xf32>
    %128 = arith.mulf %114, %125 : vector<2x1xf32>
    %129 = vector.broadcast %128 : vector<2x1xf32> to vector<2x16xf32>
    %130 = arith.mulf %129, %4 : vector<2x16xf32>
    %131 = vector.extract_strided_slice %127 {offsets = [0, 0], sizes = [2, 1], strides = [1, 1]} : vector<2x3xf32> to vector<2x1xf32>
    %132 = vector.extract_strided_slice %80 {offsets = [0, 0, 0], sizes = [2, 1, 16], strides = [1, 1, 1]} : vector<2x3x16xf32> to vector<2x1x16xf32>
    %133 = vector.shape_cast %132 : vector<2x1x16xf32> to vector<2x16xf32>
    %134 = vector.broadcast %131 : vector<2x1xf32> to vector<2x16xf32>
    %135 = arith.mulf %134, %133 : vector<2x16xf32>
    %136 = arith.addf %130, %135 : vector<2x16xf32>
    %137 = vector.extract_strided_slice %127 {offsets = [0, 1], sizes = [2, 1], strides = [1, 1]} : vector<2x3xf32> to vector<2x1xf32>
    %138 = vector.extract_strided_slice %80 {offsets = [0, 1, 0], sizes = [2, 1, 16], strides = [1, 1, 1]} : vector<2x3x16xf32> to vector<2x1x16xf32>
    %139 = vector.shape_cast %138 : vector<2x1x16xf32> to vector<2x16xf32>
    %140 = vector.broadcast %137 : vector<2x1xf32> to vector<2x16xf32>
    %141 = arith.mulf %140, %139 : vector<2x16xf32>
    %142 = arith.addf %136, %141 : vector<2x16xf32>
    %143 = vector.extract_strided_slice %127 {offsets = [0, 2], sizes = [2, 1], strides = [1, 1]} : vector<2x3xf32> to vector<2x1xf32>
    %144 = vector.extract_strided_slice %80 {offsets = [0, 2, 0], sizes = [2, 1, 16], strides = [1, 1, 1]} : vector<2x3x16xf32> to vector<2x1x16xf32>
    %145 = vector.shape_cast %144 : vector<2x1x16xf32> to vector<2x16xf32>
    %146 = vector.broadcast %143 : vector<2x1xf32> to vector<2x16xf32>
    %147 = arith.mulf %146, %145 : vector<2x16xf32>
    %148 = arith.addf %142, %147 : vector<2x16xf32>
    %149 = arith.addf %4, %79 : vector<2x16xf32>
    %150 = tpu.concatenate %149, %148 in 1 : vector<2x16xf32>, vector<2x16xf32> -> vector<2x32xf32>
    %c0_25 = arith.constant 0 : index
    %c0_26 = arith.constant 0 : index
    %151 = vector.load %arg3[%c0_25, %c0_26] : memref<32x32xf32, #tpu.memory_space<vmem>>, vector<32x32xf32>
    %cst_27 = arith.constant dense<0.000000e+00> : vector<2x32xf32>
    %152 = tpu.matmul %150, %151, %cst_27 {dimension_numbers = #tpu.dot_dimension_numbers<[1], [0], [0], [1], [0, 0, 1, 1], [], []>} : vector<2x32xf32>, vector<32x32xf32>, vector<2x32xf32> -> vector<2x32xf32>
    %cst_28 = arith.constant 0.000000e+00 : f32
    %153 = vector.broadcast %cst_28 : f32 to vector<2x32xf32>
    %154 = arith.cmpf ogt, %152, %153 : vector<2x32xf32>
    %cst_29 = arith.constant 0.000000e+00 : f32
    %155 = vector.broadcast %cst_29 : f32 to vector<2x32xf32>
    %156 = arith.minimumf %152, %155 : vector<2x32xf32>
    %157 = math.exp %156 : vector<2x32xf32>
    %cst_30 = arith.constant 1.000000e+00 : f32
    %158 = vector.broadcast %cst_30 : f32 to vector<2x32xf32>
    %159 = arith.subf %157, %158 : vector<2x32xf32>
    %160 = arith.select %154, %152, %159 : vector<2x32xi1>, vector<2x32xf32>
    %c0_31 = arith.constant 0 : index
    %c0_32 = arith.constant 0 : index
    %161 = vector.load %arg5[%c0_31, %c0_32] : memref<2x32xf32, #tpu.memory_space<vmem>>, vector<2x32xf32>
    tpu.vector_store %arg5[%c0_31, %c0_32], %160 {strides = array<i32>} : memref<2x32xf32, #tpu.memory_space<vmem>>, vector<2x32xf32>,
    return
  }
  func.func @transform_0(%arg0: i32) -> (i32, i32, i32) {
    %c0_i32 = arith.constant 0 : i32
    %c0_i32_0 = arith.constant 0 : i32
    %c0_i32_1 = arith.constant 0 : i32
    return %arg0, %c0_i32, %c0_i32_0 : i32, i32, i32
  }
  func.func @transform_1(%arg0: i32) -> (i32, i32) {
    %c0_i32 = arith.constant 0 : i32
    %c0_i32_0 = arith.constant 0 : i32
    %c0_i32_1 = arith.constant 0 : i32
    return %c0_i32, %c0_i32_0 : i32, i32
  }
  func.func @transform_2(%arg0: i32) -> (i32, i32) {
    %c0_i32 = arith.constant 0 : i32
    %c0_i32_0 = arith.constant 0 : i32
    %c0_i32_1 = arith.constant 0 : i32
    return %c0_i32, %c0_i32_0 : i32, i32
  }
  func.func @transform_3(%arg0: i32) -> (i32, i32) {
    %c0_i32 = arith.constant 0 : i32
    %c0_i32_0 = arith.constant 0 : i32
    return %arg0, %c0_i32 : i32, i32
  }
  func.func @transform_4(%arg0: i32) -> (i32, i32) {
    %c0_i32 = arith.constant 0 : i32
    %c0_i32_0 = arith.constant 0 : i32
    return %arg0, %c0_i32 : i32, i32
  }
}

</mosaic_0001>

<bundles_post_ra>
// kernel: group_gat_forward.1
= control target key start
LH: loop header
LB: loop body
LE: loop exit
PB: predicated region body
PF: predicated region fallthrough
CT: control target
= control target key end

     0   :  { %v22_v0 = vlaneseq  ;;  %s590_s0 = inlined_call_operand.vmem [shape: f32[2,8,16], index: 0, kind: input, shape index: {}]   ;;  %s591_s1 = inlined_call_operand.vmem [shape: f32[4,16], index: 1, kind: input, shape index: {}]   ;;  %s592_s2 = inlined_call_operand.vmem [shape: f32[32,32], index: 2, kind: input, shape index: {}]   ;;  %s593_s3 = inlined_call_operand.vmem [shape: f32[2,8], index: 3, kind: input, shape index: {}]   ;;  %s594_s4 = inlined_call_operand.hbm [shape: f32[2,32], index: 4, kind: output, shape index: {}]  }
   0x2   :  { %v23_v1 = vshrl.u32 %v22_v0, 7  ;;  %v66_v2 = vand.u32 127, %v22_v0 }
   0x3   :  { %9 = vsyncpa [#allocation3], 0  ;;  %v20_v3 = vld [vmem:[%s591_s1] sm:$0xf]  ;;  %v512_v8 = vld [vmem:[%s590_s0 + $0x8] sm:$0xff]  ;;  %vm186_vm0 = vcmask 130053  }
   0x4   :  { %v170_v4 = vsub.s32 3, %v23_v1  ;;  %v156_v5 = vsub.s32 2, %v23_v1  ;;  %v40_v6 = vsub.s32 1, %v23_v1  ;;  %v507_v7 = vld [vmem:[%s590_s0] sm:$0xff]  ;;  %v24_v9 = vsub.s32 0, %v23_v1  ;;  %s465_s21 = smov 123  }
   0x5   :  { %v195_v10 = vadd.s32 5, %v66_v2  ;;  %vm31_vm1 = vcmask 1041409   ;;  %vm34_vm2 = vcmask 123904   ;;  %vm56_vm3 = vcmask 126977   ;;  %v21_v34 = vld [vmem:[%s593_s3] sm:$0x3] }
   0x6   :  { %v171_v11 = vrot.slane %v20_v3, %v170_v4  ;;  %v157_v12 = vrot.slane %v20_v3, %v156_v5  ;;  %v41_v13 = vrot.slane %v20_v3, %v40_v6  ;;  %v25_v19 = vrot.slane %v20_v3, %v24_v9  ;;  %s466_s22 = smov 127   ;;  %s475_s30 = smov [#allocation2]  }
   0x7   :  { %v198_v14 = vsub.s32 %v195_v10, %v23_v1  ;;  %v67_v35 = vadd.s32 1, %v66_v2  ;;  %vm214_vm5 = vcmask 17408   ;;  %vm87_vm7 = vcmask 25600   ;;  %s376_s5 = sshll.u32 %s475_s30, 4  ;;  %s377_s5 = int_to_ptr.vmem [resolvable:$true] %s376_s5 }
   0x8   :  { %v172_v15 = vmul.f32 %v171_v11, %v507_v7  ;;  %v158_v16 = vmul.f32 %v157_v12, %v507_v7  ;;  %v159_v17 = vmul.f32 %v157_v12, %v512_v8  ;;  %v173_v18 = vmul.f32 %v171_v11, %v512_v8  ;;  %s441_s6 = scalar_lea.vmem %s377_s5, 32  ;;  %p446_p1 = scmp.lt.s32.totalorder %s377_s5, %s377_s5 }
   0x9   :  { %v42_v24 = vmul.f32 %v41_v13, %v507_v7  ;;  %v27_v26 = vmul.f32 %v25_v19, %v512_v8  ;;  %v43_v28 = vmul.f32 %v41_v13, %v512_v8  ;;  %v26_v29 = vmul.f32 %v25_v19, %v507_v7  ;;  %p442_p0 = scmp.ne.s32.totalorder %s377_s5, %s441_s6  ;;  %p447_p2 = scmp.lt.s32.totalorder %s441_s6, %s441_s6 }
   0xa   :  { %v187_v20 = vsel %vm186_vm0, %v172_v15, 0.0  ;;  %v162_v21 = vrot.slane %v159_v17, 7  ;;  %v190_v23 = vsel %vm186_vm0, %v173_v18, 0.0  ;;  %v70_v36 = vsub.s32 %v67_v35, %v23_v1 }
   0xb   :  { %188 = vadd.xlane.f32.xlu0 %v187_v20  ;;  %v57_v27 = vsel %vm56_vm3, %v42_v24, 0.0  ;;  %v30_v30 = vrot.slane %v27_v26, 7  ;;  %v60_v31 = vsel %vm56_vm3, %v43_v28, 0.0  ;;  %v176_v37 = vrot.slane %v173_v18, 7  ;;  %p448_p3 = por %p447_p2, %p446_p1 }
   0xc   :  { %v163_v22 = vsel %vm31_vm1, %v162_v21, %v158_v16  ;;  %v46_v38 = vrot.slane %v43_v28, 7  ;;  %v468_v28 = vmov 0   ;;  %vm472_vm10 = vmmov 0  }
   0xd   :  { %v165_v25 = vsel %vm34_vm2, %v163_v22, 0.0  ;;  %v32_v32 = vsel %vm31_vm1, %v30_v30, %v26_v29  ;;  %v177_v39 = vsel %vm31_vm1, %v176_v37, %v172_v15  ;;  %419 = vset.pattern.permute.xlu0 %v468_v28  ;;  %vm282_vm11 = vcmask 130048   ;;  %p449_p4 = pnand %p448_p3, %p442_p0 }
   0xe   :  { %166 = vadd.xlane.f32.xlu1 %v165_v25  ;;  %v35_v33 = vsel %vm34_vm2, %v32_v32, 0.0  ;;  %v179_v40 = vsel %vm34_vm2, %v177_v39, 0.0  ;;  %v47_v41 = vsel %vm31_vm1, %v46_v38, %v42_v24  ;;  %vm288_vm12 = vcmask 261120  }
   0xf   :  { %191 = vadd.xlane.f32.xlu0 %v190_v23  ;;  %v49_v42 = vsel %vm34_vm2, %v47_v41, 0.0  ;;  %vm368_vm13 = vcmask 254976  }
  0x13   :  { %58 = vadd.xlane.f32.xlu0 %v57_v27  ;;  %v467_v27 = vmov 1  }
  0x14   :  { %420 = vset.pattern.permute.xlu1 %v467_v27 }
  0x17   :  { %61 = vadd.xlane.f32.xlu0 %v60_v31 }
  0x1b   :  { %36 = vadd.xlane.f32.xlu0 %v35_v33 }
  0x1f   :  { %210 = vrot.lane.b32.xlu1 %v21_v34, %s465_s21 }
  0x31   :  { %83 = vrot.lane.b32.xlu0 %v21_v34, %s466_s22 }
  0x43   :  { %180 = vadd.xlane.f32.xlu1 %v179_v40 }
  0x47   :  { %50 = vadd.xlane.f32.xlu1 %v49_v42 }
  0x98   :  { %v189_v43 = vpop.xlane.xlu0 %188 }
  0x99   :  { %v199_v46 = vrot.slane %v189_v43, %v198_v14 }
  0x9b   :  { %v167_v45 = vpop.xlane.xlu1 %166 }
  0x9c   :  { %v192_v44 = vpop.xlane.xlu0 %191 }
  0x9d   :  { %v203_v47 = vrot.slane %v192_v44, %v198_v14 }
  0x9f   :  { %v204_v48 = vsel %vm31_vm1, %v203_v47, %v199_v46  ;;  %v211_v52 = vpop.permute.xlu1 %210  ;;  %v469_v46 = vmov 2   ;;  %v110_v47 = vrot.slane %v512_v8, 7 }
  0xa0   :  { %v206_v49 = vadd.f32 %v204_v48, %v167_v45  ;;  %v59_v50 = vpop.xlane.xlu0 %58 }
  0xa1   :  { %v71_v53 = vrot.slane %v59_v50, %v70_v36 }
  0xa2   :  { %vm207_vm4 = vcmp.gt.f32.partialorder %v206_v49, 0.0  ;;  %v208_v51 = vmul.f32 0.2, %v206_v49 }
  0xa4   :  { %v209_v54 = vsel %vm207_vm4, %v206_v49, %v208_v51  ;;  %v62_v55 = vpop.xlane.xlu0 %61  ;;  %v111_v51 = vsel %vm31_vm1, %v110_v47, %v507_v7 }
  0xa5   :  { %v213_v56 = vadd.f32 %v211_v52, %v209_v54  ;;  %v75_v57 = vrot.slane %v62_v55, %v70_v36  ;;  %v284_v54 = vld [vmem:[%s592_s2] sm:$0xff]  ;;  %v285_v55 = vld [vmem:[%s592_s2 + $0x8] sm:$0xff] }
  0xa7   :  { %v215_v58 = vsel %vm214_vm5, %v213_v56, -inf  ;;  %v76_v59 = vsel %vm31_vm1, %v75_v57, %v71_v53  ;;  %v470_v53 = vmov 3   ;;  %v471_v57 = vmov 0.0|0.0  }
  0xa8   :  { %216 = vmax.xlane.f32.xlu0 %v215_v58  ;;  %v37_v60 = vpop.xlane.xlu0 %36  ;;  %402 = vmatprep.subr.bf16.mxu0 %v471_v57  ;;  %v403_v58 = vpack.c.bf16 %v285_v55, %v284_v54 }
  0xa9   :  { %v78_v61 = vadd.f32 %v76_v59, %v37_v60  ;;  %v287_v59 = vld [vmem:[%s592_s2 + $0x18] sm:$0xff] }
  0xaa   :  { %404 = vmatpush3.bf16.msra.mxu0 %v403_v58 }
  0xab   :  { %vm79_vm6 = vcmp.gt.f32.partialorder %v78_v61, 0.0  ;;  %v80_v62 = vmul.f32 0.2, %v78_v61  ;;  %405 = vmatprep.subr.bf16.mxu0 %v471_v57 }
  0xac   :  { %v84_v63 = vpop.permute.xlu0 %83 }
  0xad   :  { %v81_v0 = vsel %vm79_vm6, %v78_v61, %v80_v62  ;;  %v241_v61 = vrot.slane %v507_v7, 5  ;;  %v242_v62 = vrot.slane %v512_v8, 4 }
  0xae   :  { %v86_v1 = vadd.f32 %v84_v63, %v81_v0  ;;  %v251_v63 = vrot.slane %v507_v7, 6  ;;  %v252_v0 = vrot.slane %v512_v8, 5 }
  0xb0   :  { %v88_v2 = vsel %vm87_vm7, %v86_v1, -inf }
  0xb1   :  { %89 = vmax.xlane.f32.xlu1 %v88_v2  ;;  %v243_v2 = vsel %vm31_vm1, %v242_v62, %v241_v61 }
  0xd0   :  { %v181_v3 = vpop.xlane.xlu1 %180 }
  0xd1   :  { %v182_v4 = vadd.f32 %v181_v3, %v167_v45  ;;  %v261_v3 = vrot.slane %v507_v7, 7 }
  0xd3   :  { %v184_v5 = vmul.f32 0.2, %v182_v4  ;;  %vm183_vm8 = vcmp.gt.f32.partialorder %v182_v4, 0.0 }
  0xd4   :  { %v51_v6 = vpop.xlane.xlu1 %50 }
  0xd5   :  { %v185_v9 = vsel %vm183_vm8, %v182_v4, %v184_v5  ;;  %v52_v11 = vadd.f32 %v51_v6, %v37_v60  ;;  %v262_v4 = vrot.slane %v512_v8, 6  ;;  %v253_v5 = vsel %vm31_vm1, %v252_v0, %v251_v63 }
  0xd7   :  { %v54_v15 = vmul.f32 0.2, %v52_v11  ;;  %vm53_vm9 = vcmp.gt.f32.partialorder %v52_v11, 0.0 }
  0xd9   :  { %v55_v17 = vsel %vm53_vm9, %v52_v11, %v54_v15 }
 0x135   :  { %v217_v10 = vpop.xlane.xlu0 %216 }
 0x136   :  { %v218_v12 = vmax.f32 %v185_v9, %v217_v10 }
 0x138   :  { %v219_v13 = vsub.f32 %v185_v9, %v218_v12  ;;  %v222_v14 = vsub.f32 %v213_v56, %v218_v12  ;;  %v286_v56 = vld [vmem:[%s592_s2 + $0x10] sm:$0xff]  ;;  %s474_s2 = smov 16  }
 0x139   :  { %v406_v60 = vpack.c.bf16 %v287_v59, %v286_v56 }
 0x13a   :  { %v223_v16 = vmul.f32 1.442695, %v222_v14  ;;  %v220_v29 = vmul.f32 1.442695, %v219_v13  ;;  %v263_v14 = vsel %vm31_vm1, %v262_v4, %v261_v3 }
 0x13b   :  { %407 = vmatpush3.bf16.msra.mxu0 %v406_v60 }
 0x13c   :  { %427 = vpow2.f32 %v223_v16 }
 0x13e   :  { %v90_v18 = vpop.xlane.xlu1 %89 }
 0x13f   :  { %v91_v19 = vmax.f32 %v55_v17, %v90_v18 }
 0x141   :  { %v92_v20 = vsub.f32 %v55_v17, %v91_v19  ;;  %v95_v21 = vsub.f32 %v86_v1, %v91_v19  ;;  %v473_v1 = vmov 0.0  }
 0x142   :  { %399 = vmatprep.mubr.msk.f32.mxu0 %vm472_vm10, %v473_v1 }
 0x143   :  { %v96_v22 = vmul.f32 1.442695, %v95_v21  ;;  %v93_v30 = vmul.f32 1.442695, %v92_v20  ;;  %v119_v21 = vrot.slane %v507_v7, 1 }
 0x145   :  { %429 = vpow2.f32 %v96_v22  ;;  %v128_v22 = vrot.slane %v507_v7, 2 }
 0x146   :  { %v428_v23 = vpop.eup %427  ;;  %431 = vpow2.f32 %v220_v29  ;;  %v148_v29 = vrot.slane %v507_v7, 4 }
 0x147   :  { %v225_v24 = vsel %vm214_vm5, %v428_v23, 0.0  ;;  %433 = vpow2.f32 %v93_v30  ;;  %v149_v30 = vrot.slane %v512_v8, 3 }
 0x148   :  { %226 = vadd.xlane.f32.xlu1 %v225_v24  ;;  %v120_v24 = vsel %vm31_vm1, %v512_v8, %v119_v21 }
 0x14f   :  { %v430_v25 = vpop.eup %429 }
 0x150   :  { %v98_v26 = vsel %vm87_vm7, %v430_v25, 0.0  ;;  %v432_v31 = vpop.eup %431 }
 0x151   :  { %99 = vadd.xlane.f32.xlu1 %v98_v26  ;;  %v434_v34 = vpop.eup %433  ;;  %v139_v26 = vrot.slane %v512_v8, 2 }
 0x1d5   :  { %v227_v32 = vpop.xlane.xlu1 %226 }
 0x1d6   :  { %v228_v33 = vadd.f32 %v432_v31, %v227_v32 }
 0x1d8   :  { %435 = vrcp.f32 %v228_v33 }
 0x1de   :  { %v100_v35 = vpop.xlane.xlu1 %99 }
 0x1df   :  { %v101_v36 = vadd.f32 %v434_v34, %v100_v35 }
 0x1e1   :  { %437 = vrcp.f32 %v101_v36 }
 0x1e2   :  { %v436_v37 = vpop.eup %435 }
 0x1e3   :  { %v230_v38 = vmul.f32 %v436_v37, %v228_v33 }
 0x1e5   :  { %v231_v39 = vsub.f32 2.0, %v230_v38 }
 0x1e7   :  { %v232_v40 = vmul.f32 %v436_v37, %v231_v39 }
 0x1e9   :  { %v233_v41 = vmul.f32 %v428_v23, %v232_v40  ;;  %v234_v42 = vmul.f32 %v432_v31, %v232_v40  ;;  %v129_v23 = vrot.slane %v512_v8, 1 }
 0x1eb   :  { %v438_v43 = vpop.eup %437  ;;  %248 = vperm.xlu1 %420, %v233_v41   ;;  %238 = vperm.xlu0 %419, %v233_v41   ;;  %v235_v10 = vmul.f32 %v234_v42, %v111_v51 }
 0x1ec   :  { %v103_v44 = vmul.f32 %v438_v43, %v101_v36 }
 0x1ee   :  { %v104_v45 = vsub.f32 2.0, %v103_v44 }
 0x1ef   :  { %421 = vset.pattern.permute.xlu1 %v469_v46  ;;  %426 = vset.pattern.permute.xlu0 %v469_v46 }
 0x1f0   :  { %v105_v48 = vmul.f32 %v438_v43, %v104_v45  ;;  %258 = vperm.xlu1 %421, %v233_v41  }
 0x1f2   :  { %v106_v49 = vmul.f32 %v430_v25, %v105_v48  ;;  %v107_v50 = vmul.f32 %v434_v34, %v105_v48  ;;  %v138_v25 = vrot.slane %v507_v7, 3  ;;  %v150_v34 = vsel %vm31_vm1, %v149_v30, %v148_v29 }
 0x1f4   :  { %422 = vset.pattern.permute.xlu1 %v468_v28  ;;  %v113_v52 = vmul.f32 %v111_v51, %v107_v50  ;;  %v130_v28 = vsel %vm31_vm1, %v129_v23, %v128_v22  ;;  %v140_v32 = vsel %vm31_vm1, %v139_v26, %v138_v25 }
 0x1f5   :  { %116 = vperm.xlu1 %422, %v106_v49  }
 0x1f9   :  { %423 = vset.pattern.permute.xlu1 %v467_v27 }
 0x1fa   :  { %125 = vperm.xlu1 %423, %v106_v49  }
 0x1fe   :  { %424 = vset.pattern.permute.xlu1 %v469_v46 }
 0x1ff   :  { %135 = vperm.xlu1 %424, %v106_v49  }
 0x203   :  { %425 = vset.pattern.permute.xlu1 %v470_v53 }
 0x204   :  { %145 = vperm.xlu1 %425, %v106_v49  }
 0x26a   :  { %v249_v6 = vpop.permute.xlu1 %248  ;;  %v239_v9 = vpop.permute.xlu0 %238 }
 0x26b   :  { %v245_v11 = vmul.f32 %v243_v2, %v239_v9  ;;  %v255_v12 = vmul.f32 %v253_v5, %v249_v6 }
 0x26d   :  { %v246_v13 = vadd.f32 %v245_v11, %v235_v10 }
 0x26f   :  { %v259_v15 = vpop.permute.xlu1 %258  ;;  %v256_v16 = vadd.f32 %v255_v12, %v246_v13 }
 0x270   :  { %v265_v17 = vmul.f32 %v263_v14, %v259_v15 }
 0x272   :  { %v266_v18 = vadd.f32 %v265_v17, %v256_v16 }
 0x274   :  { %279 = vrot.lane.b32.xlu1 %v266_v18, %s474_s2  ;;  %v117_v19 = vpop.permute.xlu1 %116 }
 0x275   :  { %v122_v31 = vmul.f32 %v120_v24, %v117_v19 }
 0x277   :  { %v123_v36 = vadd.f32 %v122_v31, %v113_v52 }
 0x279   :  { %v126_v20 = vpop.permute.xlu1 %125 }
 0x27a   :  { %v132_v33 = vmul.f32 %v130_v28, %v126_v20 }
 0x27c   :  { %v133_v38 = vadd.f32 %v132_v33, %v123_v36 }
 0x27e   :  { %v136_v27 = vpop.permute.xlu1 %135 }
 0x27f   :  { %v142_v37 = vmul.f32 %v140_v32, %v136_v27 }
 0x281   :  { %v143_v40 = vadd.f32 %v142_v37, %v133_v38 }
 0x283   :  { %v146_v35 = vpop.permute.xlu1 %145 }
 0x284   :  { %v152_v39 = vmul.f32 %v150_v34, %v146_v35 }
 0x286   :  { %v153_v41 = vadd.f32 %v152_v39, %v143_v40 }
 0x288   :  { %v268_v42 = vrot.slane %v153_v41, 1  ;;  %v271_v45 = vadd.f32 %v153_v41, %v507_v7 }
 0x28a   :  { %v272_v43 = vadd.f32 %v268_v42, %v512_v8 }
 0x28c   :  { %v275_v44 = vrot.slane %v272_v43, 7 }
 0x28e   :  { %v276_v46 = vsel %vm31_vm1, %v275_v44, %v271_v45 }
 0x2e6   :  { %v280_v47 = vpop.permute.xlu1 %279 }
 0x2e7   :  { %v283_v48 = vsel %vm282_vm11, %v276_v46, %v280_v47 }
 0x2e8   :  { %400 = vmatmul.mubr.msk.f32.vlgmr.msra.gmra.mrb[0].mxu0 %vm288_vm12, %v283_v48 }
 0x3bb   :  { %v358_v49 = vpop.f32.mrb[0].mxu0 }
 0x3bc   :  { %v363_v50 = vmin.f32 %v358_v49, 0.0  ;;  %v401_v51 = vpop.f32.mrb[1].mxu0  ;;  %vm362_vm14 = vcmp.gt.f32.partialorder %v358_v49, 0.0 }
 0x3be   :  { %v364_v52 = vmul.f32 1.442695, %v363_v50 }
 0x3c0   :  { %439 = vpow2.f32 %v364_v52 }
 0x3ca   :  { %v440_v53 = vpop.eup %439 }
 0x3cb   :  { %v385_v54 = vadd.f32 -1.0, %v440_v53 }
 0x3cd   :  { %v367_v7 = vsel %vm362_vm14, %v358_v49, %v385_v54 }
 0x3ce   :  { %369 = vst.msk [vmem:[#allocation2] sm:$0x3] %vm368_vm13, %v367_v7 }
 0x3cf   :  { %452 = shalt.err (!%p449_p4)
}
 0x3d0   :  { %s453_s9 = scalar_lea.hbm %s594_s4, 32 }
 0x3d1   :  { %p454_p5 = scmp.ne.s32.totalorder %s594_s4, %s453_s9  ;;  %p457_p6 = scmp.lt.u32.totalorder %s453_s9, %s594_s4 }
 0x3d3   :  { %p459_p7 = pnand %p457_p6, %p454_p5 }
 0x3d5   :  { %462 = shalt.err (!%p459_p7)
}
 0x3d6   :  { %379 = dma.vmem_to_hbm [thread:$0]  %s377_s5, 32, %s594_s4, [#allocation3]  }
 0x3d7   :  { %463 = dma.done.wait [#allocation3], 32  }
 0x3d8   :  { %464 = vsyncadd [#allocation3], 4294967264 }
 0x3d9   :  { %383 = vsyncpa [#allocation3], 1 }

</bundles_post_ra>
